<compile_context>
chip_gen: v7x
topology: tpu7x:2x2x1
jax: 0.10.0
libtpu: 0.0.40
codegen_flags: <defaults>
</compile_context>

<pallas_src>
import functools

import jax
import jax.numpy as jnp
from jax.experimental import pallas as pl
from jax.experimental.pallas import tpu as pltpu

LANE = 128
_TARGET_X_TILE_BYTES = 8 * 1024 * 1024  # per x buffer; >= ~1 MiB reaches ~85% HBM roofline


def _round_up(x, m):
    return ((x + m - 1) // m) * m


def _sublane_pack(dtype):
    # Rows per packed sublane group: 8 (f32), 16 (bf16), 32 (int8).
    return max(8, 32 // jnp.dtype(dtype).itemsize)


def _vmem_plan():
    """(planning_budget_bytes, vmem_limit_bytes), safe across v5e / v6e / v7x."""
    phys = 64 * 1024 * 1024  # v7x per-TensorCore VMEM (smallest of the three)
    try:
        info = pltpu.get_tpu_info()
        phys = int(getattr(info, "vmem_capacity_bytes", phys))
    except Exception:
        pass
    limit = max(32 * 1024 * 1024, min(phys * 3 // 4, 96 * 1024 * 1024))
    budget = limit * 3 // 4  # headroom for compiler scratch / temporaries
    return int(budget), int(limit)


# ----------------------------- kernels ---------------------------------------


def _sgc_kernel(x_ref, w_ref, b_ref, o_ref):
    # x_ref: (TN, F) streamed row tile
    # w_ref: (F, Cp) resident weight, already transposed to [K, N] for the MXU
    # b_ref: (1, Cp)  resident bias
    # o_ref: (TN, Cp) lane-dense output tile (Cp % 128 == 0)
    acc = jnp.dot(x_ref[...], w_ref[...], preferred_element_type=jnp.float32)
    o_ref[...] = (acc + b_ref[...]).astype(o_ref.dtype)


def _sgc_kernel_kblocked(x_ref, w_ref, b_ref, o_ref, acc_ref):
    # Same matmul with the contraction (F) axis blocked on grid axis 1 ("arbitrary").
    k = pl.program_id(1)

    @pl.when(k == 0)
    def _():
        acc_ref[...] = jnp.zeros_like(acc_ref)

    acc_ref[...] += jnp.dot(x_ref[...], w_ref[...], preferred_element_type=jnp.float32)

    @pl.when(k == pl.num_programs(1) - 1)
    def _():
        o_ref[...] = (acc_ref[...] + b_ref[...]).astype(o_ref.dtype)


# --------------------------- tile planning -----------------------------------


def _choose_row_tile(n, f, cp, x_item, w_item, o_item, pack, budget, w_bufs):
    """Row tile for the single-shot kernel; None if the resident weight won't fit."""
    resident = w_bufs * f * cp * w_item + cp * 4          # weight buffers + bias
    per_row = 2 * f * x_item + 2 * cp * o_item + cp * 4   # 2x x tile, 2x out tile, f32 acc
    avail = budget - resident
    if avail < per_row * pack:
        return None                                        # -> K-blocked path
    tn = min(avail // per_row,
             max(pack, _TARGET_X_TILE_BYTES // max(f * x_item, 1)))
    n_pad = _round_up(n, pack)
    tn = min(tn, n_pad)
    # Keep at least two row tiles when there are enough rows (v7x megacore balance).
    if n_pad >= 2 * max(pack, LANE):
        tn = min(tn, _round_up((n_pad + 1) // 2, pack))
    # Round to sublane packing, and to 128/256 when large.
    if tn >= 512:
        tn = (tn // 256) * 256
    elif tn >= 256:
        tn = (tn // LANE) * LANE
    else:
        tn = max(pack, (tn // pack) * pack)
    return int(tn)


def _choose_kblock_tiles(n, f, cp, x_item, w_item, o_item, pack, budget):
    """(TN, TK) for the K-blocked kernel (only used for very large F*C)."""
    # K tile: multiple of 128 lanes; the double-buffered weight slab gets ~40% of budget.
    tk = ((budget * 2 // 5) // (2 * cp * w_item)) // LANE * LANE
    tk = int(max(LANE, min(tk, _round_up(f, LANE))))
    rem = budget - 2 * tk * cp * w_item - cp * 4
    per_row = 2 * tk * x_item + 2 * cp * o_item + cp * 4
    tn = max(pack, rem // per_row) if rem > 0 else pack
    tn = min(tn, _round_up(n, pack), 1024)
    tn = max(pack, (tn // pack) * pack)
    return int(tn), tk


# ------------------------------ wrapper ---------------------------------------


@functools.partial(jax.jit, static_argnames=("single_buffer_resident",))
def sgc_forward(x, weight, bias, single_buffer_resident=True):
    """y = x @ weight.T + bias, matching torch.nn.Linear / SGC.forward semantics.

    x:      [N, nfeat]
    weight: [nclass, nfeat]   (PyTorch Linear layout)
    bias:   [nclass]
    """
    N, F = x.shape
    C = weight.shape[0]

    # Pad classes to a 128-lane multiple -> unmasked full-lane output stores.
    Cp = _round_up(C, LANE)
    b_p = (jnp.pad(bias, (0, Cp - C)) if Cp != C else bias).reshape(1, Cp)

    x_item = jnp.dtype(x.dtype).itemsize
    w_item = jnp.dtype(weight.dtype).itemsize
    o_item = x_item
    pack = _sublane_pack(x.dtype)
    budget, vmem_limit = _vmem_plan()

    cost = pl.CostEstimate(
        flops=2 * N * F * C,
        transcendentals=0,
        bytes_accessed=x_item * N * F + w_item * Cp * F + 4 * Cp + o_item * N * Cp,
    )

    def cparams(sem):
        return pltpu.CompilerParams(dimension_semantics=sem,
                                    vmem_limit_bytes=vmem_limit)

    # Resident (constant index_map) operands: request single buffering to halve
    # their VMEM footprint; fall back to default double buffering if disabled.
    resident_mode = ({"pipeline_mode": pl.Buffered(buffer_count=1)}
                     if single_buffer_resident else {})
    w_bufs = 1 if single_buffer_resident else 2

    tn = _choose_row_tile(N, F, Cp, x_item, w_item, o_item, pack, budget, w_bufs)

    if tn is not None:
        # One-time wrapper transpose to MXU-preferred [K, N] = [F, Cp]; padded
        # weight rows are zero so padded logit columns are exactly zero.
        w_t = (jnp.pad(weight, ((0, Cp - C), (0, 0))) if Cp != C else weight).T
        out_padded = pl.pallas_call(
            _sgc_kernel,
            out_shape=jax.ShapeDtypeStruct((N, Cp), x.dtype),
            grid_spec=pltpu.PrefetchScalarGridSpec(
                num_scalar_prefetch=0,
                grid=(pl.cdiv(N, tn),),
                in_specs=[
                    pl.BlockSpec((tn, F), lambda i: (i, 0)),   # x: streamed row tiles
                    pl.BlockSpec((F, Cp), lambda i: (0, 0), **resident_mode),  # weight
                    pl.BlockSpec((1, Cp), lambda i: (0, 0), **resident_mode),  # bias
                ],
                out_specs=pl.BlockSpec((tn, Cp), lambda i: (i, 0)),
            ),
            compiler_params=cparams(("parallel",)),
            cost_estimate=cost,
        )(x, w_t, b_p)
    else:
        # Resident weight does not fit VMEM: block the contraction (F) axis as well,
        # accumulating in an f32 VMEM scratch across the "arbitrary" K axis.
        tn, tk = _choose_kblock_tiles(N, F, Cp, x_item, w_item, o_item, pack, budget)
        Fp = _round_up(F, tk)
        x_p = jnp.pad(x, ((0, 0), (0, Fp - F))) if Fp != F else x
        w_t = jnp.pad(weight, ((0, Cp - C), (0, Fp - F))).T    # [Fp, Cp], zero padded
        out_padded = pl.pallas_call(
            _sgc_kernel_kblocked,
            out_shape=jax.ShapeDtypeStruct((N, Cp), x.dtype),
            grid_spec=pltpu.PrefetchScalarGridSpec(
                num_scalar_prefetch=0,
                grid=(pl.cdiv(N, tn), Fp // tk),
                in_specs=[
                    pl.BlockSpec((tn, tk), lambda i, k: (i, k)),
                    pl.BlockSpec((tk, Cp), lambda i, k: (k, 0)),
                    pl.BlockSpec((1, Cp), lambda i, k: (0, 0), **resident_mode),
                ],
                out_specs=pl.BlockSpec((tn, Cp), lambda i, k: (i, 0)),
                scratch_shapes=[pltpu.VMEM((tn, Cp), jnp.float32)],
            ),
            compiler_params=cparams(("parallel", "arbitrary")),
            cost_estimate=cost,
        )(x_p, w_t, b_p)

    # Padded logit columns are exactly zero; slice them off to match the module's
    # [N, nclass] output. (Consumers that can take padded logits could skip this
    # slice and save one HBM pass over the output.)
    return out_padded if Cp == C else out_padded[:, :C]


def run_sgc(x, weight, bias):
    try:
        return sgc_forward(x, weight, bias)
    except Exception:
        # Fallback if this JAX build rejects single-buffered (Buffered(1)) resident specs.
        return sgc_forward(x, weight, bias, single_buffer_resident=False)


if __name__ == "__main__":
    key = jax.random.PRNGKey(0)
    k_x, k_w, k_b, k_x2, k_w2, k_b2 = jax.random.split(key, 6)

    # Small shapes consistent with the module: N nodes, nfeat features, nclass classes.
    N, nfeat, nclass = 8, 32, 16
    x = jax.random.normal(k_x, (N, nfeat), dtype=jnp.float32)
    bound = 1.0 / jnp.sqrt(jnp.float32(nfeat))
    weight = jax.random.uniform(k_w, (nclass, nfeat), jnp.float32, -bound, bound)
    bias = jax.random.uniform(k_b, (nclass,), jnp.float32, -bound, bound)

    y = run_sgc(x, weight, bias)
    jax.block_until_ready(y)
    y_ref = x @ weight.T + bias
    assert y.shape == (N, nclass)
    assert jnp.allclose(y, y_ref, atol=1e-5, rtol=1e-5)

    # Second check: class / feature dims that are not lane multiples (exercises the
    # lane padding + slice path and a different row-tile choice).
    N2, F2, C2 = 64, 48, 10
    x2 = jax.random.normal(k_x2, (N2, F2), dtype=jnp.float32)
    bound2 = 1.0 / jnp.sqrt(jnp.float32(F2))
    w2 = jax.random.uniform(k_w2, (C2, F2), jnp.float32, -bound2, bound2)
    b2 = jax.random.uniform(k_b2, (C2,), jnp.float32, -bound2, bound2)
    y2 = run_sgc(x2, w2, b2)
    jax.block_until_ready(y2)
    assert y2.shape == (N2, C2)
    assert jnp.allclose(y2, x2 @ w2.T + b2, atol=1e-5, rtol=1e-5)

    print("KERNEL_OK")
</pallas_src>

<mosaic_0001>
module attributes {stable_mosaic.version = 11 : i64} {
  func.func @_sgc_kernel(%arg0: i32, %arg1: memref<8x32xf32, #tpu.memory_space<vmem>>, %arg2: memref<32x128xf32, #tpu.memory_space<vmem>>, %arg3: memref<1x128xf32, #tpu.memory_space<vmem>>, %arg4: memref<8x128xf32, #tpu.memory_space<vmem>>) attributes {dimension_semantics = [#tpu.dimension_semantics<parallel>], iteration_bounds = array<i64: 1>, scalar_prefetch = 0 : i64, scratch_operands = 0 : i64, tpu.core_type = #tpu.core_type<tc>, window_params = [{transform_indices = @transform_0, window_bounds = array<i64: 8, 32>}, {pipeline_mode = #tpu.pipeline_mode<synchronous>, transform_indices = @transform_1, window_bounds = array<i64: 32, 128>}, {pipeline_mode = #tpu.pipeline_mode<synchronous>, transform_indices = @transform_2, window_bounds = array<i64: 1, 128>}, {transform_indices = @transform_3, window_bounds = array<i64: 8, 128>}]} {
    %c0 = arith.constant 0 : index
    %c0_0 = arith.constant 0 : index
    %0 = vector.load %arg1[%c0, %c0_0] : memref<8x32xf32, #tpu.memory_space<vmem>>, vector<8x32xf32>
    %c0_1 = arith.constant 0 : index
    %c0_2 = arith.constant 0 : index
    %1 = vector.load %arg2[%c0_1, %c0_2] : memref<32x128xf32, #tpu.memory_space<vmem>>, vector<32x128xf32>
    %cst = arith.constant dense<0.000000e+00> : vector<8x128xf32>
    %2 = tpu.matmul %0, %1, %cst {dimension_numbers = #tpu.dot_dimension_numbers<[1], [0], [0], [1], [0, 0, 1, 1], [], []>} : vector<8x32xf32>, vector<32x128xf32>, vector<8x128xf32> -> vector<8x128xf32>
    %c0_3 = arith.constant 0 : index
    %c0_4 = arith.constant 0 : index
    %3 = vector.load %arg3[%c0_3, %c0_4] : memref<1x128xf32, #tpu.memory_space<vmem>>, vector<1x128xf32>
    %4 = vector.broadcast %3 : vector<1x128xf32> to vector<8x128xf32>
    %5 = arith.addf %2, %4 : vector<8x128xf32>
    %c0_5 = arith.constant 0 : index
    %c0_6 = arith.constant 0 : index
    %6 = vector.load %arg4[%c0_5, %c0_6] : memref<8x128xf32, #tpu.memory_space<vmem>>, vector<8x128xf32>
    tpu.vector_store %arg4[%c0_5, %c0_6], %5 {strides = array<i32>} : memref<8x128xf32, #tpu.memory_space<vmem>>, vector<8x128xf32>,
    return
  }
  func.func @transform_0(%arg0: i32) -> (i32, i32) {
    %c0_i32 = arith.constant 0 : i32
    %c0_i32_0 = arith.constant 0 : i32
    return %arg0, %c0_i32 : i32, i32
  }
  func.func @transform_1(%arg0: i32) -> (i32, i32) {
    %c0_i32 = arith.constant 0 : i32
    %c0_i32_0 = arith.constant 0 : i32
    %c0_i32_1 = arith.constant 0 : i32
    return %c0_i32, %c0_i32_0 : i32, i32
  }
  func.func @transform_2(%arg0: i32) -> (i32, i32) {
    %c0_i32 = arith.constant 0 : i32
    %c0_i32_0 = arith.constant 0 : i32
    %c0_i32_1 = arith.constant 0 : i32
    return %c0_i32, %c0_i32_0 : i32, i32
  }
  func.func @transform_3(%arg0: i32) -> (i32, i32) {
    %c0_i32 = arith.constant 0 : i32
    %c0_i32_0 = arith.constant 0 : i32
    return %arg0, %c0_i32 : i32, i32
  }
}

module attributes {stable_mosaic.version = 11 : i64} {
  func.func @_sgc_kernel(%arg0: i32, %arg1: memref<8x32xf32, #tpu.memory_space<vmem>>, %arg2: memref<32x128xf32, #tpu.memory_space<vmem>>, %arg3: memref<1x128xf32, #tpu.memory_space<vmem>>, %arg4: memref<8x128xf32, #tpu.memory_space<vmem>>) attributes {dimension_semantics = [#tpu.dimension_semantics<parallel>], iteration_bounds = array<i64: 1>, scalar_prefetch = 0 : i64, scratch_operands = 0 : i64, tpu.core_type = #tpu.core_type<tc>, window_params = [{transform_indices = @transform_0, window_bounds = array<i64: 8, 32>}, {pipeline_mode = #tpu.pipeline_mode<synchronous>, transform_indices = @transform_1, window_bounds = array<i64: 32, 128>}, {pipeline_mode = #tpu.pipeline_mode<synchronous>, transform_indices = @transform_2, window_bounds = array<i64: 1, 128>}, {transform_indices = @transform_3, window_bounds = array<i64: 8, 128>}]} {
    %c0 = arith.constant 0 : index
    %c0_0 = arith.constant 0 : index
    %0 = vector.load %arg1[%c0, %c0_0] : memref<8x32xf32, #tpu.memory_space<vmem>>, vector<8x32xf32>
    %c0_1 = arith.constant 0 : index
    %c0_2 = arith.constant 0 : index
    %1 = vector.load %arg2[%c0_1, %c0_2] : memref<32x128xf32, #tpu.memory_space<vmem>>, vector<32x128xf32>
    %cst = arith.constant dense<0.000000e+00> : vector<8x128xf32>
    %2 = tpu.matmul %0, %1, %cst {dimension_numbers = #tpu.dot_dimension_numbers<[1], [0], [0], [1], [0, 0, 1, 1], [], []>} : vector<8x32xf32>, vector<32x128xf32>, vector<8x128xf32> -> vector<8x128xf32>
    %c0_3 = arith.constant 0 : index
    %c0_4 = arith.constant 0 : index
    %3 = vector.load %arg3[%c0_3, %c0_4] : memref<1x128xf32, #tpu.memory_space<vmem>>, vector<1x128xf32>
    %4 = vector.broadcast %3 : vector<1x128xf32> to vector<8x128xf32>
    %5 = arith.addf %2, %4 : vector<8x128xf32>
    %c0_5 = arith.constant 0 : index
    %c0_6 = arith.constant 0 : index
    %6 = vector.load %arg4[%c0_5, %c0_6] : memref<8x128xf32, #tpu.memory_space<vmem>>, vector<8x128xf32>
    tpu.vector_store %arg4[%c0_5, %c0_6], %5 {strides = array<i32>} : memref<8x128xf32, #tpu.memory_space<vmem>>, vector<8x128xf32>,
    return
  }
  func.func @transform_0(%arg0: i32) -> (i32, i32) {
    %c0_i32 = arith.constant 0 : i32
    %c0_i32_0 = arith.constant 0 : i32
    return %arg0, %c0_i32 : i32, i32
  }
  func.func @transform_1(%arg0: i32) -> (i32, i32) {
    %c0_i32 = arith.constant 0 : i32
    %c0_i32_0 = arith.constant 0 : i32
    %c0_i32_1 = arith.constant 0 : i32
    return %c0_i32, %c0_i32_0 : i32, i32
  }
  func.func @transform_2(%arg0: i32) -> (i32, i32) {
    %c0_i32 = arith.constant 0 : i32
    %c0_i32_0 = arith.constant 0 : i32
    %c0_i32_1 = arith.constant 0 : i32
    return %c0_i32, %c0_i32_0 : i32, i32
  }
  func.func @transform_3(%arg0: i32) -> (i32, i32) {
    %c0_i32 = arith.constant 0 : i32
    %c0_i32_0 = arith.constant 0 : i32
    return %arg0, %c0_i32 : i32, i32
  }
}

</mosaic_0001>

<bundles_post_ra>
// kernel: sgc_forward.1
= control target key start
LH: loop header
LB: loop body
LE: loop exit
PB: predicated region body
PF: predicated region fallthrough
CT: control target
= control target key end

     0   :  { %v168_v3 = vmov 0.0|0.0   ;;  %vm169_vm0 = vmmov 0   ;;  %v170_v6 = vmov 0.0   ;;  %s222_s0 = inlined_call_operand.vmem [shape: f32[8,32], index: 0, kind: input, shape index: {}]   ;;  %s223_s1 = inlined_call_operand.vmem [shape: f32[32,128], index: 1, kind: input, shape index: {}]   ;;  %s224_s2 = inlined_call_operand.vmem [shape: f32[1,128], index: 2, kind: input, shape index: {}]   ;;  %s225_s3 = inlined_call_operand.hbm [shape: f32[8,128], index: 3, kind: output, shape index: {}]  }
   0x1   :  { %v16_v0 = vld [vmem:[%s223_s1] sm:$0xff]  ;;  %v17_v1 = vld [vmem:[%s223_s1 + $0x8] sm:$0xff]  ;;  %v18_v2 = vld [vmem:[%s223_s1 + $0x10] sm:$0xff]  ;;  %134 = vmatprep.subr.bf16.mxu0 %v168_v3  ;;  %131 = vmatprep.mubr.msk.f32.mxu0 %vm169_vm0, %v170_v6 }
   0x2   :  { %v135_v4 = vpack.c.bf16 %v17_v1, %v16_v0  ;;  %v19_v5 = vld [vmem:[%s223_s1 + $0x18] sm:$0xff] }
   0x3   :  { %8 = vsyncpa [#allocation3], 0  ;;  %v138_v7 = vpack.c.bf16 %v19_v5, %v18_v2  ;;  %v15_v8 = vld [vmem:[%s222_s0] sm:$0xff]  ;;  %vm27_vm1 = vcmask 261120   ;;  %s171_s24 = smov [#allocation2]  }
   0x4   :  { %136 = vmatpush3.bf16.msra.mxu0 %v135_v4  ;;  %v116_v9 = vld [vmem:[%s224_s2] ss:$0 sm:$0xff]  ;;  %s108_s1 = sshll.u32 %s171_s24, 4  ;;  %s109_s1 = int_to_ptr.vmem [resolvable:$true] %s108_s1 }
   0x5   :  { %137 = vmatprep.subr.bf16.mxu0 %v168_v3  ;;  %s144_s25 = scalar_lea.vmem %s109_s1, 128  ;;  %p149_p1 = scmp.lt.s32.totalorder %s109_s1, %s109_s1 }
   0x6   :  { %p145_p0 = scmp.ne.s32.totalorder %s109_s1, %s144_s25  ;;  %p150_p2 = scmp.lt.s32.totalorder %s144_s25, %s144_s25 }
   0x8   :  { %139 = vmatpush3.bf16.msra.mxu0 %v138_v7  ;;  %p151_p3 = por %p150_p2, %p149_p1 }
   0xa   :  { %p152_p4 = pnand %p151_p3, %p145_p0 }
   0xb   :  { %132 = vmatmul.mubr.msk.f32.vlgmr.msra.gmra.mrb[0].mxu0 %vm27_vm1, %v15_v8 }
  0xde   :  { %v97_v10 = vpop.f32.mrb[0].mxu0 }
  0xdf   :  { %v98_v11 = vadd.f32 %v116_v9, %v97_v10  ;;  %v133_v12 = vpop.f32.mrb[1].mxu0 }
  0xe1   :  { %101 = vst [vmem:[#allocation2] sm:$0xff] %v98_v11 }
  0xe2   :  { %155 = shalt.err (!%p152_p4)
}
  0xe3   :  { %s156_s27 = scalar_lea.hbm %s225_s3, 128 }
  0xe4   :  { %p157_p5 = scmp.ne.s32.totalorder %s225_s3, %s156_s27  ;;  %p160_p6 = scmp.lt.u32.totalorder %s156_s27, %s225_s3 }
  0xe6   :  { %p162_p7 = pnand %p160_p6, %p157_p5 }
  0xe8   :  { %165 = shalt.err (!%p162_p7)
}
  0xe9   :  { %111 = dma.vmem_to_hbm [thread:$0]  %s109_s1, 128, %s225_s3, [#allocation3]  }
  0xea   :  { %166 = dma.done.wait [#allocation3], 128  }
  0xeb   :  { %167 = vsyncadd [#allocation3], 4294967168 }
  0xec   :  { %115 = vsyncpa [#allocation3], 1 }

// kernel: sgc_forward.1
= control target key start
LH: loop header
LB: loop body
LE: loop exit
PB: predicated region body
PF: predicated region fallthrough
CT: control target
= control target key end

     0   :  { %v168_v3 = vmov 0.0|0.0   ;;  %vm169_vm0 = vmmov 0   ;;  %v170_v6 = vmov 0.0   ;;  %s222_s0 = inlined_call_operand.vmem [shape: f32[8,32], index: 0, kind: input, shape index: {}]   ;;  %s223_s1 = inlined_call_operand.vmem [shape: f32[32,128], index: 1, kind: input, shape index: {}]   ;;  %s224_s2 = inlined_call_operand.vmem [shape: f32[1,128], index: 2, kind: input, shape index: {}]   ;;  %s225_s3 = inlined_call_operand.hbm [shape: f32[8,128], index: 3, kind: output, shape index: {}]  }
   0x1   :  { %v16_v0 = vld [vmem:[%s223_s1] sm:$0xff]  ;;  %v17_v1 = vld [vmem:[%s223_s1 + $0x8] sm:$0xff]  ;;  %v18_v2 = vld [vmem:[%s223_s1 + $0x10] sm:$0xff]  ;;  %134 = vmatprep.subr.bf16.mxu0 %v168_v3  ;;  %131 = vmatprep.mubr.msk.f32.mxu0 %vm169_vm0, %v170_v6 }
   0x2   :  { %v135_v4 = vpack.c.bf16 %v17_v1, %v16_v0  ;;  %v19_v5 = vld [vmem:[%s223_s1 + $0x18] sm:$0xff] }
   0x3   :  { %8 = vsyncpa [#allocation3], 0  ;;  %v138_v7 = vpack.c.bf16 %v19_v5, %v18_v2  ;;  %v15_v8 = vld [vmem:[%s222_s0] sm:$0xff]  ;;  %vm27_vm1 = vcmask 261120   ;;  %s171_s24 = smov [#allocation2]  }
   0x4   :  { %136 = vmatpush3.bf16.msra.mxu0 %v135_v4  ;;  %v116_v9 = vld [vmem:[%s224_s2] ss:$0 sm:$0xff]  ;;  %s108_s1 = sshll.u32 %s171_s24, 4  ;;  %s109_s1 = int_to_ptr.vmem [resolvable:$true] %s108_s1 }
   0x5   :  { %137 = vmatprep.subr.bf16.mxu0 %v168_v3  ;;  %s144_s25 = scalar_lea.vmem %s109_s1, 128  ;;  %p149_p1 = scmp.lt.s32.totalorder %s109_s1, %s109_s1 }
   0x6   :  { %p145_p0 = scmp.ne.s32.totalorder %s109_s1, %s144_s25  ;;  %p150_p2 = scmp.lt.s32.totalorder %s144_s25, %s144_s25 }
   0x8   :  { %139 = vmatpush3.bf16.msra.mxu0 %v138_v7  ;;  %p151_p3 = por %p150_p2, %p149_p1 }
   0xa   :  { %p152_p4 = pnand %p151_p3, %p145_p0 }
   0xb   :  { %132 = vmatmul.mubr.msk.f32.vlgmr.msra.gmra.mrb[0].mxu0 %vm27_vm1, %v15_v8 }
  0xde   :  { %v97_v10 = vpop.f32.mrb[0].mxu0 }
  0xdf   :  { %v98_v11 = vadd.f32 %v116_v9, %v97_v10  ;;  %v133_v12 = vpop.f32.mrb[1].mxu0 }
  0xe1   :  { %101 = vst [vmem:[#allocation2] sm:$0xff] %v98_v11 }
  0xe2   :  { %155 = shalt.err (!%p152_p4)
}
  0xe3   :  { %s156_s27 = scalar_lea.hbm %s225_s3, 128 }
  0xe4   :  { %p157_p5 = scmp.ne.s32.totalorder %s225_s3, %s156_s27  ;;  %p160_p6 = scmp.lt.u32.totalorder %s156_s27, %s225_s3 }
  0xe6   :  { %p162_p7 = pnand %p160_p6, %p157_p5 }
  0xe8   :  { %165 = shalt.err (!%p162_p7)
}
  0xe9   :  { %111 = dma.vmem_to_hbm [thread:$0]  %s109_s1, 128, %s225_s3, [#allocation3]  }
  0xea   :  { %166 = dma.done.wait [#allocation3], 128  }
  0xeb   :  { %167 = vsyncadd [#allocation3], 4294967168 }
  0xec   :  { %115 = vsyncpa [#allocation3], 1 }

</bundles_post_ra>
